<compile_context>
chip_gen: v7x
topology: tpu7x:2x2x1
jax: 0.10.0
libtpu: 0.0.40
codegen_flags: <defaults>
</compile_context>

<pallas_src>
import jax
import jax.numpy as jnp
from jax.experimental import pallas as pl
from jax.experimental.pallas import tpu as pltpu

_LANES = 512          # lane-dense last dim (multiple of 128)
_MAX_TILE_ROWS = 512  # 512 x 512 x 4B = 1 MiB per block

# 16-bit integer thresholds: drop if bits < round(p * 2**16)
_THR_P03 = 19661   # p = 0.3
_THR_P04 = 26214   # p = 0.4
_THR_P02 = 13107   # p = 0.2
_GOLDEN = 0x9E3779B9


def _round_up(x, m):
    return (x + m - 1) // m * m


def _mix32(x):
    """lowbias32 finalizer: high-quality 32-bit mixer (uint32 in/out)."""
    x = x ^ (x >> 16)
    x = x * jnp.uint32(0x7FEB352D)
    x = x ^ (x >> 15)
    x = x * jnp.uint32(0x846CA68B)
    x = x ^ (x >> 16)
    return x


def mymodel_kernel(seed_ref, z_ref, o_ref):
    tr, c = z_ref.shape

    # Global flattened element index of every element in this tile.
    row = jax.lax.broadcasted_iota(jnp.int32, (tr, c), 0)
    col = jax.lax.broadcasted_iota(jnp.int32, (tr, c), 1)
    gidx = (pl.program_id(0) * tr + row) * c + col

    seed_u = seed_ref[0].astype(jnp.uint32)
    base = gidx.astype(jnp.uint32) + seed_u * jnp.uint32(_GOLDEN)

    # Three independent 32-bit draws per element.
    b0 = _mix32(base)
    b1 = _mix32(base ^ jnp.uint32(0x68BC21EB))
    b2 = _mix32(base ^ jnp.uint32(0xB5297A4D))

    # Dropout keep-tests in the integer domain (16-bit fields per draw).
    u_a = b0 & jnp.uint32(0xFFFF)
    u_b = b0 >> 16
    u_c = b1 & jnp.uint32(0xFFFF)
    u_d = b1 >> 16
    keep1 = u_a >= jnp.uint32(_THR_P03)   # dropout p = 0.3
    keep3 = u_b >= jnp.uint32(_THR_P04)   # dropout p = 0.4
    keep4 = u_c >= jnp.uint32(_THR_P03)   # dropout p = 0.3
    keep5 = u_d >= jnp.uint32(_THR_P02)   # dropout p = 0.2

    zero = jnp.float32(0.0)
    scale = (jnp.where(keep1, jnp.float32(1.0 / 0.7), zero)
             + jnp.where(keep3, jnp.float32(1.0 / 0.6), zero)
             + jnp.where(keep4, jnp.float32(1.0 / 0.7), zero)
             + jnp.where(keep5, jnp.float32(1.0 / 0.8), zero))

    # t2 = torch.rand_like(z): uniform [0, 1) from the top 24 bits of b2.
    u2 = ((b2 >> 8).astype(jnp.int32).astype(jnp.float32)
          * jnp.float32(1.0 / (1 << 24)))

    o_ref[...] = z_ref[...] * scale + u2


def my_model_forward(z, seed=0):
    orig_shape = z.shape
    orig_dtype = z.dtype
    total = int(z.size)

    c = _LANES
    rows = -(-total // c)
    tile_r = min(_MAX_TILE_ROWS, _round_up(rows, 8))
    rows_p = _round_up(rows, tile_r)
    padded = rows_p * c

    zf = jnp.ravel(z).astype(jnp.float32)
    if padded != total:
        zf = jnp.pad(zf, (0, padded - total))
    z2 = zf.reshape(rows_p, c)

    seed_arr = jnp.array([seed], dtype=jnp.int32)
    grid = (rows_p // tile_r,)

    out = pl.pallas_call(
        mymodel_kernel,
        out_shape=jax.ShapeDtypeStruct((rows_p, c), jnp.float32),
        grid_spec=pltpu.PrefetchScalarGridSpec(
            num_scalar_prefetch=1,  # seed lands in SMEM
            grid=grid,
            in_specs=[pl.BlockSpec((tile_r, c), lambda i, seed_ref: (i, 0))],
            out_specs=pl.BlockSpec((tile_r, c), lambda i, seed_ref: (i, 0)),
        ),
        compiler_params=pltpu.CompilerParams(
            dimension_semantics=("parallel",),
        ),
        cost_estimate=pl.CostEstimate(
            flops=40 * padded, transcendentals=0, bytes_accessed=8 * padded),
    )(seed_arr, z2)

    out = out.reshape(-1)[:total].reshape(orig_shape).astype(orig_dtype)
    return out


if __name__ == "__main__":
    key = jax.random.PRNGKey(0)
    # Small NCHW input consistent with a conv-style module input.
    z = jax.random.normal(key, (2, 4, 16, 16), dtype=jnp.float32)

    out = my_model_forward(z, seed=0)
    out = jax.block_until_ready(out)

    assert out.shape == z.shape and out.dtype == z.dtype
    assert bool(jnp.all(jnp.isfinite(out)))
    print("KERNEL_OK")
</pallas_src>

<mosaic_0001>
module attributes {stable_mosaic.version = 11 : i64} {
  func.func @mymodel_kernel(%arg0: i32, %arg1: memref<1xi32, #tpu.memory_space<smem>>, %arg2: memref<8x512xf32, #tpu.memory_space<vmem>>, %arg3: memref<8x512xf32, #tpu.memory_space<vmem>>) attributes {dimension_semantics = [#tpu.dimension_semantics<parallel>], iteration_bounds = array<i64: 1>, scalar_prefetch = 1 : i64, scratch_operands = 0 : i64, tpu.core_type = #tpu.core_type<tc>, window_params = [{transform_indices = @transform_0, window_bounds = array<i64: 8, 512>}, {transform_indices = @transform_1, window_bounds = array<i64: 8, 512>}]} {
    %0 = tpu.iota {dimensions = array<i32: 0>} : vector<8x512xi32>
    %1 = tpu.iota {dimensions = array<i32: 1>} : vector<8x512xi32>
    %c8_i32 = arith.constant 8 : i32
    %2 = arith.muli %arg0, %c8_i32 : i32
    %3 = vector.broadcast %2 : i32 to vector<8x512xi32>
    %4 = arith.addi %3, %0 : vector<8x512xi32>
    %c512_i32 = arith.constant 512 : i32
    %5 = vector.broadcast %c512_i32 : i32 to vector<8x512xi32>
    %6 = arith.muli %4, %5 : vector<8x512xi32>
    %7 = arith.addi %6, %1 : vector<8x512xi32>
    %c0 = arith.constant 0 : index
    %8 = memref.load %arg1[%c0] : memref<1xi32, #tpu.memory_space<smem>>
    %c-1640531527_i32 = arith.constant -1640531527 : i32
    %9 = arith.muli %8, %c-1640531527_i32 : i32
    %10 = vector.broadcast %9 : i32 to vector<8x512xi32>
    %11 = arith.addi %7, %10 : vector<8x512xi32>
    %c16_i32 = arith.constant 16 : i32
    %12 = vector.broadcast %c16_i32 : i32 to vector<8x512xi32>
    %13 = arith.shrui %11, %12 : vector<8x512xi32>
    %14 = arith.xori %11, %13 : vector<8x512xi32>
    %c2146121005_i32 = arith.constant 2146121005 : i32
    %15 = vector.broadcast %c2146121005_i32 : i32 to vector<8x512xi32>
    %16 = arith.muli %14, %15 : vector<8x512xi32>
    %c15_i32 = arith.constant 15 : i32
    %17 = vector.broadcast %c15_i32 : i32 to vector<8x512xi32>
    %18 = arith.shrui %16, %17 : vector<8x512xi32>
    %19 = arith.xori %16, %18 : vector<8x512xi32>
    %c-2073254261_i32 = arith.constant -2073254261 : i32
    %20 = vector.broadcast %c-2073254261_i32 : i32 to vector<8x512xi32>
    %21 = arith.muli %19, %20 : vector<8x512xi32>
    %c16_i32_0 = arith.constant 16 : i32
    %22 = vector.broadcast %c16_i32_0 : i32 to vector<8x512xi32>
    %23 = arith.shrui %21, %22 : vector<8x512xi32>
    %24 = arith.xori %21, %23 : vector<8x512xi32>
    %c1757159915_i32 = arith.constant 1757159915 : i32
    %25 = vector.broadcast %c1757159915_i32 : i32 to vector<8x512xi32>
    %26 = arith.xori %11, %25 : vector<8x512xi32>
    %c16_i32_1 = arith.constant 16 : i32
    %27 = vector.broadcast %c16_i32_1 : i32 to vector<8x512xi32>
    %28 = arith.shrui %26, %27 : vector<8x512xi32>
    %29 = arith.xori %26, %28 : vector<8x512xi32>
    %c2146121005_i32_2 = arith.constant 2146121005 : i32
    %30 = vector.broadcast %c2146121005_i32_2 : i32 to vector<8x512xi32>
    %31 = arith.muli %29, %30 : vector<8x512xi32>
    %c15_i32_3 = arith.constant 15 : i32
    %32 = vector.broadcast %c15_i32_3 : i32 to vector<8x512xi32>
    %33 = arith.shrui %31, %32 : vector<8x512xi32>
    %34 = arith.xori %31, %33 : vector<8x512xi32>
    %c-2073254261_i32_4 = arith.constant -2073254261 : i32
    %35 = vector.broadcast %c-2073254261_i32_4 : i32 to vector<8x512xi32>
    %36 = arith.muli %34, %35 : vector<8x512xi32>
    %c16_i32_5 = arith.constant 16 : i32
    %37 = vector.broadcast %c16_i32_5 : i32 to vector<8x512xi32>
    %38 = arith.shrui %36, %37 : vector<8x512xi32>
    %39 = arith.xori %36, %38 : vector<8x512xi32>
    %c-1255572915_i32 = arith.constant -1255572915 : i32
    %40 = vector.broadcast %c-1255572915_i32 : i32 to vector<8x512xi32>
    %41 = arith.xori %11, %40 : vector<8x512xi32>
    %c16_i32_6 = arith.constant 16 : i32
    %42 = vector.broadcast %c16_i32_6 : i32 to vector<8x512xi32>
    %43 = arith.shrui %41, %42 : vector<8x512xi32>
    %44 = arith.xori %41, %43 : vector<8x512xi32>
    %c2146121005_i32_7 = arith.constant 2146121005 : i32
    %45 = vector.broadcast %c2146121005_i32_7 : i32 to vector<8x512xi32>
    %46 = arith.muli %44, %45 : vector<8x512xi32>
    %c15_i32_8 = arith.constant 15 : i32
    %47 = vector.broadcast %c15_i32_8 : i32 to vector<8x512xi32>
    %48 = arith.shrui %46, %47 : vector<8x512xi32>
    %49 = arith.xori %46, %48 : vector<8x512xi32>
    %c-2073254261_i32_9 = arith.constant -2073254261 : i32
    %50 = vector.broadcast %c-2073254261_i32_9 : i32 to vector<8x512xi32>
    %51 = arith.muli %49, %50 : vector<8x512xi32>
    %c16_i32_10 = arith.constant 16 : i32
    %52 = vector.broadcast %c16_i32_10 : i32 to vector<8x512xi32>
    %53 = arith.shrui %51, %52 : vector<8x512xi32>
    %54 = arith.xori %51, %53 : vector<8x512xi32>
    %c65535_i32 = arith.constant 65535 : i32
    %55 = vector.broadcast %c65535_i32 : i32 to vector<8x512xi32>
    %56 = arith.andi %24, %55 : vector<8x512xi32>
    %c16_i32_11 = arith.constant 16 : i32
    %57 = vector.broadcast %c16_i32_11 : i32 to vector<8x512xi32>
    %58 = arith.shrui %24, %57 : vector<8x512xi32>
    %c65535_i32_12 = arith.constant 65535 : i32
    %59 = vector.broadcast %c65535_i32_12 : i32 to vector<8x512xi32>
    %60 = arith.andi %39, %59 : vector<8x512xi32>
    %c16_i32_13 = arith.constant 16 : i32
    %61 = vector.broadcast %c16_i32_13 : i32 to vector<8x512xi32>
    %62 = arith.shrui %39, %61 : vector<8x512xi32>
    %c19661_i32 = arith.constant 19661 : i32
    %63 = vector.broadcast %c19661_i32 : i32 to vector<8x512xi32>
    %64 = arith.cmpi uge, %56, %63 : vector<8x512xi32>
    %c26214_i32 = arith.constant 26214 : i32
    %65 = vector.broadcast %c26214_i32 : i32 to vector<8x512xi32>
    %66 = arith.cmpi uge, %58, %65 : vector<8x512xi32>
    %c19661_i32_14 = arith.constant 19661 : i32
    %67 = vector.broadcast %c19661_i32_14 : i32 to vector<8x512xi32>
    %68 = arith.cmpi uge, %60, %67 : vector<8x512xi32>
    %c13107_i32 = arith.constant 13107 : i32
    %69 = vector.broadcast %c13107_i32 : i32 to vector<8x512xi32>
    %70 = arith.cmpi uge, %62, %69 : vector<8x512xi32>
    %cst = arith.constant 1.42857146 : f32
    %cst_15 = arith.constant 0.000000e+00 : f32
    %71 = vector.broadcast %cst : f32 to vector<8x512xf32>
    %72 = vector.broadcast %cst_15 : f32 to vector<8x512xf32>
    %73 = arith.select %64, %71, %72 : vector<8x512xi1>, vector<8x512xf32>
    %cst_16 = arith.constant 1.66666663 : f32
    %cst_17 = arith.constant 0.000000e+00 : f32
    %74 = vector.broadcast %cst_16 : f32 to vector<8x512xf32>
    %75 = vector.broadcast %cst_17 : f32 to vector<8x512xf32>
    %76 = arith.select %66, %74, %75 : vector<8x512xi1>, vector<8x512xf32>
    %77 = arith.addf %73, %76 : vector<8x512xf32>
    %cst_18 = arith.constant 1.42857146 : f32
    %cst_19 = arith.constant 0.000000e+00 : f32
    %78 = vector.broadcast %cst_18 : f32 to vector<8x512xf32>
    %79 = vector.broadcast %cst_19 : f32 to vector<8x512xf32>
    %80 = arith.select %68, %78, %79 : vector<8x512xi1>, vector<8x512xf32>
    %81 = arith.addf %77, %80 : vector<8x512xf32>
    %cst_20 = arith.constant 1.250000e+00 : f32
    %cst_21 = arith.constant 0.000000e+00 : f32
    %82 = vector.broadcast %cst_20 : f32 to vector<8x512xf32>
    %83 = vector.broadcast %cst_21 : f32 to vector<8x512xf32>
    %84 = arith.select %70, %82, %83 : vector<8x512xi1>, vector<8x512xf32>
    %85 = arith.addf %81, %84 : vector<8x512xf32>
    %c8_i32_22 = arith.constant 8 : i32
    %86 = vector.broadcast %c8_i32_22 : i32 to vector<8x512xi32>
    %87 = arith.shrui %54, %86 : vector<8x512xi32>
    %88 = arith.sitofp %87 : vector<8x512xi32> to vector<8x512xf32>
    %cst_23 = arith.constant 5.96046448E-8 : f32
    %89 = vector.broadcast %cst_23 : f32 to vector<8x512xf32>
    %90 = arith.mulf %88, %89 : vector<8x512xf32>
    %c0_24 = arith.constant 0 : index
    %c0_25 = arith.constant 0 : index
    %91 = vector.load %arg2[%c0_24, %c0_25] : memref<8x512xf32, #tpu.memory_space<vmem>>, vector<8x512xf32>
    %92 = arith.mulf %91, %85 : vector<8x512xf32>
    %93 = arith.addf %92, %90 : vector<8x512xf32>
    %c0_26 = arith.constant 0 : index
    %c0_27 = arith.constant 0 : index
    %94 = vector.load %arg3[%c0_26, %c0_27] : memref<8x512xf32, #tpu.memory_space<vmem>>, vector<8x512xf32>
    tpu.vector_store %arg3[%c0_26, %c0_27], %93 {strides = array<i32>} : memref<8x512xf32, #tpu.memory_space<vmem>>, vector<8x512xf32>,
    return
  }
  func.func @transform_0(%arg0: i32, %arg1: memref<1xi32, #tpu.memory_space<smem>>) -> (i32, i32) {
    %c0_i32 = arith.constant 0 : i32
    %c0_i32_0 = arith.constant 0 : i32
    return %arg0, %c0_i32 : i32, i32
  }
  func.func @transform_1(%arg0: i32, %arg1: memref<1xi32, #tpu.memory_space<smem>>) -> (i32, i32) {
    %c0_i32 = arith.constant 0 : i32
    %c0_i32_0 = arith.constant 0 : i32
    return %arg0, %c0_i32 : i32, i32
  }
}

</mosaic_0001>

<bundles_post_ra>
// kernel: tpu_custom_call.1
= control target key start
LH: loop header
LB: loop body
LE: loop exit
PB: predicated region body
PF: predicated region fallthrough
CT: control target
= control target key end

     0   :  { %8 = vsyncpa [#allocation5], 0  ;;  %s378_s0 = inlined_call_operand.<no memory space> [shape: s32[1], index: 0, kind: input, shape index: {}]   ;;  %s379_s1 = inlined_call_operand.hbm [shape: f32[8,512], index: 1, kind: input, shape index: {}]   ;;  %s380_s2 = inlined_call_operand.hbm [shape: f32[8,512], index: 2, kind: output, shape index: {}]  }
   0x1   :  { %9 = vsyncpa [#allocation6], 0  ;;  %s303_s9 = smov [#allocation4]   ;;  %s255_s13 = scalar_lea.hbm %s379_s1, 512 }
   0x2   :  { %s16_s10 = sshll.u32 %s303_s9, 4  ;;  %p256_p0 = scmp.ne.s32.totalorder %s379_s1, %s255_s13  ;;  %s17_s10 = int_to_ptr.vmem [resolvable:$true] %s16_s10 }
   0x3   :  { %p259_p1 = scmp.lt.u32.totalorder %s255_s13, %s379_s1 }
   0x5   :  { %p261_p2 = pnand %p259_p1, %p256_p0 }
   0x7   :  { %264 = shalt.err (!%p261_p2)
}
   0x8   :  { %s265_s18 = scalar_lea.vmem %s17_s10, 512  ;;  %p270_p4 = scmp.lt.s32.totalorder %s17_s10, %s17_s10 }
   0x9   :  { %p266_p3 = scmp.ne.s32.totalorder %s17_s10, %s265_s18  ;;  %p271_p5 = scmp.lt.s32.totalorder %s265_s18, %s265_s18 }
   0xb   :  { %p272_p6 = por %p271_p5, %p270_p4 }
   0xd   :  { %p273_p7 = pnand %p272_p6, %p266_p3 }
   0xf   :  { %276 = shalt.err (!%p273_p7)
}
  0x10   :  { %19 = dma.hbm_to_vmem [thread:$0]  %s379_s1, 512, %s17_s10, [#allocation5]  }
  0x11   :  { %299 = dma.done.wait [#allocation5], 512  }
  0x12   :  { %300 = vsyncadd [#allocation5], 4294966784  ;;  %v23_v0 = vlaneseq  ;;  %s39_s23 = smul.u32 2654435769, %s378_s0  ;;  %s305_s0 = smov [#allocation7]  }
  0x13   :  { %s243_s1 = sshll.u32 %s305_s0, 4  ;;  %s244_s1 = int_to_ptr.vmem [resolvable:$true] %s243_s1 }
  0x14   :  { %v24_v1 = vshrl.u32 %v23_v0, 7  ;;  %v26_v2 = vand.u32 127, %v23_v0  ;;  %v40_v7 = vstv %s39_s23  ;;  %s277_s24 = scalar_lea.vmem %s244_s1, 512  ;;  %p282_p9 = scmp.lt.s32.totalorder %s244_s1, %s244_s1 }
  0x15   :  { %p278_p8 = scmp.ne.s32.totalorder %s244_s1, %s277_s24  ;;  %p283_p10 = scmp.lt.s32.totalorder %s277_s24, %s277_s24 }
  0x16   :  { %v33_v3 = vmul.u32 512, %v24_v1  ;;  %v27_v4 = vadd.s32 128, %v26_v2  ;;  %v28_v5 = vadd.s32 256, %v26_v2  ;;  %v29_v6 = vadd.s32 384, %v26_v2 }
  0x17   :  { %p284_p11 = por %p283_p10, %p282_p9 }
  0x18   :  { %v34_v8 = vadd.s32 %v33_v3, %v26_v2  ;;  %v35_v9 = vadd.s32 %v33_v3, %v27_v4  ;;  %v36_v10 = vadd.s32 %v33_v3, %v28_v5  ;;  %v37_v11 = vadd.s32 %v33_v3, %v29_v6 }
  0x19   :  { %p285_p12 = pnand %p284_p11, %p278_p8 }
  0x1a   :  { %v41_v12 = vadd.s32 %v40_v7, %v34_v8  ;;  %v42_v13 = vadd.s32 %v40_v7, %v35_v9  ;;  %v336_v14 = vadd.s32 %v40_v7, %v36_v10  ;;  %v338_v15 = vadd.s32 %v40_v7, %v37_v11 }
  0x1c   :  { %v45_v16 = vshrl.u32 %v41_v12, 16  ;;  %v77_v17 = vxor.u32 1757159915, %v41_v12  ;;  %v113_v18 = vxor.u32 3039394381, %v41_v12  ;;  %v46_v19 = vshrl.u32 %v42_v13, 16 }
  0x1d   :  { %v78_v20 = vxor.u32 1757159915, %v42_v13  ;;  %v114_v21 = vxor.u32 3039394381, %v42_v13  ;;  %v47_v22 = vshrl.u32 %v336_v14, 16  ;;  %v48_v23 = vshrl.u32 %v338_v15, 16 }
  0x1e   :  { %v49_v24 = vxor.u32 %v45_v16, %v41_v12  ;;  %v81_v25 = vshrl.u32 %v77_v17, 16  ;;  %v117_v26 = vshrl.u32 %v113_v18, 16  ;;  %v50_v27 = vxor.u32 %v46_v19, %v42_v13 }
  0x1f   :  { %v82_v28 = vshrl.u32 %v78_v20, 16  ;;  %v118_v29 = vshrl.u32 %v114_v21, 16  ;;  %v51_v30 = vxor.u32 %v47_v22, %v336_v14  ;;  %v79_v31 = vxor.u32 1757159915, %v336_v14 }
  0x20   :  { %v53_v32 = vmul.u32 2146121005, %v49_v24  ;;  %v85_v33 = vxor.u32 %v81_v25, %v77_v17  ;;  %v121_v34 = vxor.u32 %v117_v26, %v113_v18  ;;  %v54_v35 = vmul.u32 2146121005, %v50_v27 }
  0x21   :  { %v86_v36 = vxor.u32 %v82_v28, %v78_v20  ;;  %v122_v37 = vxor.u32 %v118_v29, %v114_v21  ;;  %v55_v38 = vmul.u32 2146121005, %v51_v30  ;;  %v83_v39 = vshrl.u32 %v79_v31, 16 }
  0x22   :  { %v57_v40 = vshrl.u32 %v53_v32, 15  ;;  %v89_v41 = vmul.u32 2146121005, %v85_v33  ;;  %v125_v42 = vmul.u32 2146121005, %v121_v34  ;;  %v58_v43 = vshrl.u32 %v54_v35, 15 }
  0x23   :  { %v90_v44 = vmul.u32 2146121005, %v86_v36  ;;  %v126_v45 = vmul.u32 2146121005, %v122_v37  ;;  %v59_v46 = vshrl.u32 %v55_v38, 15  ;;  %v87_v47 = vxor.u32 %v83_v39, %v79_v31 }
  0x24   :  { %v61_v48 = vxor.u32 %v57_v40, %v53_v32  ;;  %v93_v49 = vshrl.u32 %v89_v41, 15  ;;  %v129_v50 = vshrl.u32 %v125_v42, 15  ;;  %v62_v51 = vxor.u32 %v58_v43, %v54_v35  ;;  %v221_v40 = vld [vmem:[#allocation4] sm:$0xff] }
  0x25   :  { %v94_v52 = vshrl.u32 %v90_v44, 15  ;;  %v130_v53 = vshrl.u32 %v126_v45, 15  ;;  %v63_v54 = vxor.u32 %v59_v46, %v55_v38  ;;  %v91_v55 = vmul.u32 2146121005, %v87_v47 }
  0x26   :  { %v65_v56 = vmul.u32 2221713035, %v61_v48  ;;  %v97_v57 = vxor.u32 %v93_v49, %v89_v41  ;;  %v133_v58 = vxor.u32 %v129_v50, %v125_v42  ;;  %v66_v59 = vmul.u32 2221713035, %v62_v51 }
  0x27   :  { %v98_v60 = vxor.u32 %v94_v52, %v90_v44  ;;  %v134_v61 = vxor.u32 %v130_v53, %v126_v45  ;;  %v67_v62 = vmul.u32 2221713035, %v63_v54  ;;  %v95_v63 = vshrl.u32 %v91_v55, 15 }
  0x28   :  { %v69_v0 = vshrl.u32 %v65_v56, 16  ;;  %v101_v1 = vmul.u32 2221713035, %v97_v57  ;;  %v137_v2 = vmul.u32 2221713035, %v133_v58  ;;  %v70_v3 = vshrl.u32 %v66_v59, 16 }
  0x29   :  { %v102_v4 = vmul.u32 2221713035, %v98_v60  ;;  %v138_v5 = vmul.u32 2221713035, %v134_v61  ;;  %v71_v6 = vshrl.u32 %v67_v62, 16  ;;  %v99_v7 = vxor.u32 %v95_v63, %v91_v55  ;;  %v222_v57 = vld [vmem:[#allocation4 + $0x8] sm:$0xff] }
  0x2a   :  { %v73_v8 = vxor.u32 %v69_v0, %v65_v56  ;;  %v105_v9 = vshrl.u32 %v101_v1, 16  ;;  %v141_v10 = vshrl.u32 %v137_v2, 16  ;;  %v74_v11 = vxor.u32 %v70_v3, %v66_v59 }
  0x2b   :  { %v106_v12 = vshrl.u32 %v102_v4, 16  ;;  %v142_v13 = vshrl.u32 %v138_v5, 16  ;;  %v75_v16 = vxor.u32 %v71_v6, %v67_v62  ;;  %v103_v17 = vmul.u32 2221713035, %v99_v7 }
  0x2c   :  { %v109_v18 = vxor.u32 %v105_v9, %v101_v1  ;;  %v145_v19 = vxor.u32 %v141_v10, %v137_v2  ;;  %v149_v20 = vand.u32 65535, %v73_v8  ;;  %v153_v21 = vshrl.u32 %v73_v8, 16 }
  0x2d   :  { %v110_v22 = vxor.u32 %v106_v12, %v102_v4  ;;  %v146_v24 = vxor.u32 %v142_v13, %v138_v5  ;;  %v150_v25 = vand.u32 65535, %v74_v11  ;;  %v154_v26 = vshrl.u32 %v74_v11, 16 }
  0x2e   :  { %v157_v27 = vand.u32 65535, %v109_v18  ;;  %v161_v28 = vshrl.u32 %v109_v18, 16  ;;  %vm165_vm0 = vcmp.ge.u32.totalorder %v149_v20, 19661  ;;  %vm169_vm1 = vcmp.ge.u32.totalorder %v153_v21, 26214 }
  0x2f   :  { %v304_v29 = vmov 0.0   ;;  %v209_v32 = vshrl.u32 %v145_v19, 8  ;;  %v158_v33 = vand.u32 65535, %v110_v22  ;;  %v162_v35 = vshrl.u32 %v110_v22, 16 }
  0x30   :  { %v181_v30 = vsel %vm165_vm0, 1.4285715, %v304_v29  ;;  %v185_v31 = vsel %vm169_vm1, 1.6666666, %v304_v29  ;;  %vm173_vm2 = vcmp.ge.u32.totalorder %v157_v27, 19661  ;;  %vm177_vm3 = vcmp.ge.u32.totalorder %v161_v28, 13107 }
  0x31   :  { %v189_v34 = vadd.f32 %v185_v31, %v181_v30  ;;  %v193_v36 = vsel %vm173_vm2, 1.4285715, %v304_v29  ;;  %v201_v37 = vsel %vm177_vm3, 1.25, %v304_v29  ;;  %v213_v38 = vcvt.s32.f32 %v209_v32 }
  0x32   :  { %vm166_vm4 = vcmp.ge.u32.totalorder %v150_v25, 19661  ;;  %vm170_vm5 = vcmp.ge.u32.totalorder %v154_v26, 26214  ;;  %vm174_vm6 = vcmp.ge.u32.totalorder %v158_v33, 19661  ;;  %vm178_vm7 = vcmp.ge.u32.totalorder %v162_v35, 13107  ;;  %v223_v35 = vld [vmem:[#allocation4 + $0x10] sm:$0xff] }
  0x33   :  { %v197_v39 = vadd.f32 %v193_v36, %v189_v34  ;;  %v217_v41 = vmul.f32 5.9604645e-08, %v213_v38  ;;  %v182_v42 = vsel %vm166_vm4, 1.4285715, %v304_v29  ;;  %v186_v43 = vsel %vm170_vm5, 1.6666666, %v304_v29 }
  0x34   :  { %v202_v44 = vsel %vm178_vm7, 1.25, %v304_v29  ;;  %v190_v46 = vadd.f32 %v186_v43, %v182_v42  ;;  %v194_v47 = vsel %vm174_vm6, 1.4285715, %v304_v29  ;;  %v210_v48 = vshrl.u32 %v146_v24, 8 }
  0x35   :  { %v205_v45 = vadd.f32 %v201_v37, %v197_v39  ;;  %v107_v49 = vshrl.u32 %v103_v17, 16  ;;  %v115_v50 = vxor.u32 3039394381, %v336_v14  ;;  %v151_v51 = vand.u32 65535, %v75_v16 }
  0x36   :  { %v155_v52 = vshrl.u32 %v75_v16, 16  ;;  %v198_v54 = vadd.f32 %v194_v47, %v190_v46  ;;  %v214_v55 = vcvt.s32.f32 %v210_v48  ;;  %v52_v56 = vxor.u32 %v48_v23, %v338_v15 }
  0x37   :  { %v225_v53 = vmul.f32 %v221_v40, %v205_v45  ;;  %v111_v58 = vxor.u32 %v107_v49, %v103_v17  ;;  %v119_v59 = vshrl.u32 %v115_v50, 16  ;;  %vm167_vm8 = vcmp.ge.u32.totalorder %v151_v51, 19661 }
  0x38   :  { %vm171_vm9 = vcmp.ge.u32.totalorder %v155_v52, 26214  ;;  %v206_v61 = vadd.f32 %v202_v44, %v198_v54  ;;  %v218_v62 = vmul.f32 5.9604645e-08, %v214_v55  ;;  %v183_v14 = vsel %vm167_vm8, 1.4285715, %v304_v29 }
  0x39   :  { %v229_v60 = vadd.f32 %v225_v53, %v217_v41  ;;  %v123_v63 = vxor.u32 %v119_v59, %v115_v50  ;;  %v159_v0 = vand.u32 65535, %v111_v58  ;;  %v187_v2 = vsel %vm171_vm9, 1.6666666, %v304_v29 }
  0x3a   :  { %v226_v1 = vmul.f32 %v222_v57, %v206_v61  ;;  %v56_v3 = vmul.u32 2146121005, %v52_v56  ;;  %v80_v4 = vxor.u32 1757159915, %v338_v15  ;;  %v163_v5 = vshrl.u32 %v111_v58, 16 }
  0x3b   :  { %233 = vst [vmem:[#allocation7] sm:$0xff] %v229_v60  ;;  %v127_v23 = vmul.u32 2146121005, %v123_v63  ;;  %vm175_vm10 = vcmp.ge.u32.totalorder %v159_v0, 19661  ;;  %v116_v6 = vxor.u32 3039394381, %v338_v15  ;;  %v191_v10 = vadd.f32 %v187_v2, %v183_v14 }
  0x3c   :  { %v230_v7 = vadd.f32 %v226_v1, %v218_v62  ;;  %v60_v8 = vshrl.u32 %v56_v3, 15  ;;  %v84_v11 = vshrl.u32 %v80_v4, 16  ;;  %v195_v13 = vsel %vm175_vm10, 1.4285715, %v304_v29  ;;  %v224_v60 = vld [vmem:[#allocation4 + $0x18] sm:$0xff] }
  0x3d   :  { %v131_v9 = vshrl.u32 %v127_v23, 15  ;;  %v120_v12 = vshrl.u32 %v116_v6, 16  ;;  %vm179_vm11 = vcmp.ge.u32.totalorder %v163_v5, 13107  ;;  %v199_v22 = vadd.f32 %v195_v13, %v191_v10 }
  0x3e   :  { %234 = vst [vmem:[#allocation7 + $0x8] sm:$0xff] %v230_v7  ;;  %v64_v16 = vxor.u32 %v60_v8, %v56_v3  ;;  %v88_v18 = vxor.u32 %v84_v11, %v80_v4  ;;  %v203_v15 = vsel %vm179_vm11, 1.25, %v304_v29 }
  0x3f   :  { %v135_v17 = vxor.u32 %v131_v9, %v127_v23  ;;  %v124_v19 = vxor.u32 %v120_v12, %v116_v6  ;;  %v207_v33 = vadd.f32 %v203_v15, %v199_v22 }
  0x40   :  { %v68_v20 = vmul.u32 2221713035, %v64_v16  ;;  %v92_v24 = vmul.u32 2146121005, %v88_v18 }
  0x41   :  { %v139_v21 = vmul.u32 2221713035, %v135_v17  ;;  %v128_v26 = vmul.u32 2146121005, %v124_v19  ;;  %v227_v43 = vmul.f32 %v223_v35, %v207_v33 }
  0x42   :  { %v72_v25 = vshrl.u32 %v68_v20, 16  ;;  %v96_v28 = vshrl.u32 %v92_v24, 15 }
  0x43   :  { %v143_v27 = vshrl.u32 %v139_v21, 16  ;;  %v132_v31 = vshrl.u32 %v128_v26, 15 }
  0x44   :  { %v76_v30 = vxor.u32 %v72_v25, %v68_v20  ;;  %v100_v34 = vxor.u32 %v96_v28, %v92_v24 }
  0x45   :  { %v147_v32 = vxor.u32 %v143_v27, %v139_v21  ;;  %v136_v36 = vxor.u32 %v132_v31, %v128_v26 }
  0x46   :  { %v152_v37 = vand.u32 65535, %v76_v30  ;;  %v156_v38 = vshrl.u32 %v76_v30, 16  ;;  %v104_v40 = vmul.u32 2221713035, %v100_v34 }
  0x47   :  { %v211_v39 = vshrl.u32 %v147_v32, 8  ;;  %v140_v41 = vmul.u32 2221713035, %v136_v36 }
  0x48   :  { %vm168_vm12 = vcmp.ge.u32.totalorder %v152_v37, 19661  ;;  %vm172_vm13 = vcmp.ge.u32.totalorder %v156_v38, 26214  ;;  %v108_v44 = vshrl.u32 %v104_v40, 16 }
  0x49   :  { %v215_v42 = vcvt.s32.f32 %v211_v39  ;;  %v144_v45 = vshrl.u32 %v140_v41, 16  ;;  %v184_v46 = vsel %vm168_vm12, 1.4285715, %v304_v29  ;;  %v188_v47 = vsel %vm172_vm13, 1.6666666, %v304_v29 }
  0x4a   :  { %v112_v49 = vxor.u32 %v108_v44, %v104_v40  ;;  %v192_v54 = vadd.f32 %v188_v47, %v184_v46 }
  0x4b   :  { %v219_v48 = vmul.f32 5.9604645e-08, %v215_v42  ;;  %v148_v50 = vxor.u32 %v144_v45, %v140_v41 }
  0x4c   :  { %v160_v52 = vand.u32 65535, %v112_v49  ;;  %v164_v53 = vshrl.u32 %v112_v49, 16 }
  0x4d   :  { %v231_v51 = vadd.f32 %v227_v43, %v219_v48  ;;  %v212_v55 = vshrl.u32 %v148_v50, 8 }
  0x4e   :  { %vm176_vm14 = vcmp.ge.u32.totalorder %v160_v52, 19661  ;;  %vm180_vm15 = vcmp.ge.u32.totalorder %v164_v53, 13107 }
  0x4f   :  { %235 = vst [vmem:[#allocation7 + $0x10] sm:$0xff] %v231_v51  ;;  %v196_v56 = vsel %vm176_vm14, 1.4285715, %v304_v29  ;;  %v204_v57 = vsel %vm180_vm15, 1.25, %v304_v29  ;;  %v216_v58 = vcvt.s32.f32 %v212_v55 }
  0x50   :  { %v200_v59 = vadd.f32 %v196_v56, %v192_v54 }
  0x51   :  { %v220_v62 = vmul.f32 5.9604645e-08, %v216_v58 }
  0x52   :  { %v208_v61 = vadd.f32 %v204_v57, %v200_v59 }
  0x54   :  { %v228_v63 = vmul.f32 %v224_v60, %v208_v61 }
  0x56   :  { %v232_v0 = vadd.f32 %v228_v63, %v220_v62 }
  0x58   :  { %236 = vst [vmem:[#allocation7 + $0x18] sm:$0xff] %v232_v0 }
  0x59   :  { %288 = shalt.err (!%p285_p12)
}
  0x5a   :  { %s289_s27 = scalar_lea.hbm %s380_s2, 512 }
  0x5b   :  { %p290_p13 = scmp.ne.s32.totalorder %s380_s2, %s289_s27  ;;  %p293_p0 = scmp.lt.u32.totalorder %s289_s27, %s380_s2 }
  0x5d   :  { %p295_p1 = pnand %p293_p0, %p290_p13 }
  0x5f   :  { %298 = shalt.err (!%p295_p1)
}
  0x60   :  { %246 = dma.vmem_to_hbm [thread:$0]  %s244_s1, 512, %s380_s2, [#allocation6]  }
  0x61   :  { %301 = dma.done.wait [#allocation6], 512  }
  0x62   :  { %302 = vsyncadd [#allocation6], 4294966784 }
  0x63   :  { %250 = vsyncpa [#allocation5], 1 }
  0x64   :  { %251 = vsyncpa [#allocation6], 1 }

</bundles_post_ra>
